<compile_context>
chip_gen: v7x
topology: tpu7x:2x2x1
jax: 0.10.0
libtpu: 0.0.40
codegen_flags: <defaults>
</compile_context>

<pallas_src>
import functools
import math

import jax
import jax.numpy as jnp
from jax import lax
from jax.experimental import pallas as pl
from jax.experimental.pallas import tpu as pltpu


def _round_up(x, m):
    return ((x + m - 1) // m) * m


def _ntxent_neg_kernel(z_row_ref, z_col_ref, neg_ref, acc_ref, *, n_pad_rows):
    """One (t_r, t_c) tile of exp(z z^T): online row-sum accumulation (flash-style)."""
    c = pl.program_id(1)
    n_c = pl.num_programs(1)

    @pl.when(c == 0)
    def _init():
        acc_ref[...] = jnp.zeros_like(acc_ref)

    # z is pre-normalized (and pre-scaled by 1/sqrt(T)) bf16 from the wrapper, so the
    # MXU output is already cos/T.  Contract dim 1 of BOTH operands -> the transposed
    # RHS is consumed natively (no materialized z.T copy).
    sim = lax.dot_general(z_row_ref[...], z_col_ref[...], (((1,), (1,)), ((), ())),
                          preferred_element_type=jnp.float32)          # (t_r, t_c) f32
    acc_ref[...] += jnp.sum(jnp.exp(sim), axis=1, keepdims=True)        # online row sum

    @pl.when(c == n_c - 1)
    def _finalize():
        # Diagonal (self-similarity) term: subtract exp(z_i . z_i) computed in f32 from
        # the same bf16 operand the MXU saw (no (n, n) iota/eye mask ever built).
        zr = z_row_ref[...].astype(jnp.float32)
        neg = acc_ref[...] - jnp.exp(jnp.sum(zr * zr, axis=1, keepdims=True))
        if n_pad_rows:
            # Zero pad rows (normalized to the zero vector) contribute exactly
            # exp(0) == 1 to every valid row's sum.
            neg = neg - jnp.float32(n_pad_rows)
        neg_ref[...] = neg


def ntxent_loss(y, y_hat, temperature=1.0, *, row_tile=256, col_tile=512,
                matmul_dtype=jnp.bfloat16):
    """NT-Xent loss for two (B, D) views; matches NTXentLoss.forward."""
    assert y.shape == y_hat.shape and y.ndim == 2
    B, D = y.shape
    temperature = float(temperature)
    inv_sqrt_t = float(1.0 / math.sqrt(temperature))

    # ---- wrapper-side preprocessing (all O(B*D), done once) ------------------------
    y32 = y.astype(jnp.float32)
    yh32 = y_hat.astype(jnp.float32)
    yb = jnp.concatenate([y32, yh32], axis=0)                            # (2B, D)
    nrm = jnp.sqrt(jnp.sum(yb * yb, axis=1, keepdims=True))
    z = yb * (inv_sqrt_t / jnp.maximum(nrm, 1e-12))   # F.normalize eps, 1/sqrt(T) folded

    # Positive pairs: pure f32 in the wrapper (same math the old kernel finalize did),
    # which frees the third double-buffered "partner" VMEM input entirely.
    # TODO(synk): F.cosine_similarity uses eps=1e-8 per-norm clamping; mirrored here.
    yn = jnp.maximum(jnp.sqrt(jnp.sum(y32 * y32, axis=1)), 1e-8)
    hn = jnp.maximum(jnp.sqrt(jnp.sum(yh32 * yh32, axis=1)), 1e-8)
    cos = jnp.sum(y32 * yh32, axis=1) / (yn * hn)
    pos = jnp.exp(cos / temperature)
    pos = jnp.concatenate([pos, pos], axis=0)                            # (2B,)

    # ---- padding + tile selection ---------------------------------------------------
    N = 2 * B
    D_p = max(128, _round_up(D, 128))          # lane multiple; zero columns are exact
    t_r = min(row_tile, _round_up(N, 16))      # 16-row granularity: bf16 sublane packing
    t_c = min(col_tile, _round_up(N, 16))
    N_p = _round_up(N, math.lcm(t_r, t_c))     # pad rows are zero vectors, corrected in-kernel
    n_pad = N_p - N
    zb = jnp.pad(z, ((0, n_pad), (0, D_p - D))).astype(matmul_dtype)     # bf16 HBM stream

    n_r, n_c = N_p // t_r, N_p // t_c

    # Explicit VMEM budget: double-buffered bf16 row/col tiles + f32 sim/exp temps.
    itemsize = jnp.dtype(matmul_dtype).itemsize
    est = 2 * (t_r + t_c) * D_p * itemsize + 2 * t_r * t_c * 4 + 8 * t_r * 4
    vmem_limit = int(min(100 * 2**20, max(32 * 2**20, 2 * est)))
    # TODO(synk): on v7x (64 MiB physical VMEM) shrink row_tile/col_tile if est grows
    # past ~24 MiB; tiles here are sized for the small-D default and fit all gens.

    kernel = functools.partial(_ntxent_neg_kernel, n_pad_rows=n_pad)
    neg = pl.pallas_call(
        kernel,
        out_shape=jax.ShapeDtypeStruct((N_p, 1), jnp.float32),
        grid_spec=pltpu.PrefetchScalarGridSpec(
            num_scalar_prefetch=0,
            grid=(n_r, n_c),
            in_specs=[
                pl.BlockSpec((t_r, D_p), lambda r, c: (r, 0)),   # row block: resident over c
                pl.BlockSpec((t_c, D_p), lambda r, c: (c, 0)),   # col block: the only per-step DMA
            ],
            out_specs=pl.BlockSpec((t_r, 1), lambda r, c: (r, 0)),
            scratch_shapes=[pltpu.VMEM((t_r, 1), jnp.float32)],
        ),
        compiler_params=pltpu.CompilerParams(
            dimension_semantics=("parallel", "arbitrary"),
            vmem_limit_bytes=vmem_limit,
        ),
    )(zb, zb)

    neg = neg[:N, 0]
    # Tiny O(2B) epilogue stays in JAX so the row axis can be megacore-parallel.
    return -jnp.log(jnp.mean(pos / neg))


def _ntxent_ref(y, y_hat, temperature=1.0):
    """Pure-f32 transcription of NTXentLoss.forward."""
    yb = jnp.concatenate([y, y_hat], axis=0).astype(jnp.float32)
    ybn = yb / jnp.maximum(jnp.linalg.norm(yb, axis=1, keepdims=True), 1e-12)
    couples = jnp.exp(jnp.dot(ybn, ybn.T, precision=lax.Precision.HIGHEST) / temperature)
    m = couples.shape[0]
    couples = jnp.where(jnp.eye(m, dtype=bool), 0.0, couples)
    neg = couples.sum(axis=1)
    cos = jnp.sum(y * y_hat, axis=1) / (
        jnp.maximum(jnp.linalg.norm(y, axis=1), 1e-8)
        * jnp.maximum(jnp.linalg.norm(y_hat, axis=1), 1e-8))
    pos = jnp.exp(cos / temperature)
    pos = jnp.concatenate([pos, pos], axis=0)
    return -jnp.log(jnp.mean(pos / neg))


def _ntxent_ref_bf16(y, y_hat, temperature=1.0):
    """Reference mirroring the kernel's bf16-operand / f32-accumulate matmul path."""
    inv_sqrt_t = 1.0 / math.sqrt(float(temperature))
    yb = jnp.concatenate([y, y_hat], axis=0).astype(jnp.float32)
    nrm = jnp.sqrt(jnp.sum(yb * yb, axis=1, keepdims=True))
    z = yb * (inv_sqrt_t / jnp.maximum(nrm, 1e-12))
    zm = z.astype(jnp.bfloat16)
    z32 = zm.astype(jnp.float32)
    sim = jnp.dot(zm, zm.T, preferred_element_type=jnp.float32)
    neg = jnp.sum(jnp.exp(sim), axis=1) - jnp.exp(jnp.sum(z32 * z32, axis=1))
    y32 = y.astype(jnp.float32)
    yh32 = y_hat.astype(jnp.float32)
    yn = jnp.maximum(jnp.sqrt(jnp.sum(y32 * y32, axis=1)), 1e-8)
    hn = jnp.maximum(jnp.sqrt(jnp.sum(yh32 * yh32, axis=1)), 1e-8)
    pos = jnp.exp(jnp.sum(y32 * yh32, axis=1) / (yn * hn) / float(temperature))
    pos = jnp.concatenate([pos, pos], axis=0)
    return -jnp.log(jnp.mean(pos / neg))


if __name__ == "__main__":
    key = jax.random.PRNGKey(0)
    k1, k2, k3, k4 = jax.random.split(key, 4)
    temperature = 0.5

    # Small embedding batch / feature dim (aligned case, no row padding).
    B, D = 8, 32
    y = jax.random.normal(k1, (B, D), dtype=jnp.float32)
    y_hat = jax.random.normal(k2, (B, D), dtype=jnp.float32)
    loss = jax.block_until_ready(ntxent_loss(y, y_hat, temperature=temperature))
    ref_f32 = _ntxent_ref(y, y_hat, temperature=temperature)
    ref_bf16 = _ntxent_ref_bf16(y, y_hat, temperature=temperature)
    assert jnp.allclose(loss, ref_f32, rtol=2e-2, atol=2e-2), (loss, ref_f32)
    assert jnp.allclose(loss, ref_bf16, rtol=2e-3, atol=2e-3), (loss, ref_bf16)

    # Awkward (non-power-of-two) batch exercises the zero-pad-row correction path.
    B2, D2 = 13, 40
    y2 = jax.random.normal(k3, (B2, D2), dtype=jnp.float32)
    y2_hat = jax.random.normal(k4, (B2, D2), dtype=jnp.float32)
    loss2 = jax.block_until_ready(ntxent_loss(y2, y2_hat, temperature=temperature))
    ref2_f32 = _ntxent_ref(y2, y2_hat, temperature=temperature)
    ref2_bf16 = _ntxent_ref_bf16(y2, y2_hat, temperature=temperature)
    assert jnp.allclose(loss2, ref2_f32, rtol=2e-2, atol=2e-2), (loss2, ref2_f32)
    assert jnp.allclose(loss2, ref2_bf16, rtol=2e-3, atol=2e-3), (loss2, ref2_bf16)

    print("KERNEL_OK")
</pallas_src>

<mosaic_0001>
module attributes {stable_mosaic.version = 11 : i64} {
  func.func @_ntxent_neg_kernel(%arg0: i32, %arg1: i32, %arg2: memref<16x128xbf16, #tpu.memory_space<vmem>>, %arg3: memref<16x128xbf16, #tpu.memory_space<vmem>>, %arg4: memref<16x1xf32, #tpu.memory_space<vmem>>, %arg5: memref<16x1xf32, #tpu.memory_space<vmem>>) attributes {dimension_semantics = [#tpu.dimension_semantics<parallel>, #tpu.dimension_semantics<arbitrary>], iteration_bounds = array<i64: 1, 1>, scalar_prefetch = 0 : i64, scratch_operands = 1 : i64, tpu.core_type = #tpu.core_type<tc>, window_params = [{transform_indices = @transform_0, window_bounds = array<i64: 16, 128>}, {transform_indices = @transform_1, window_bounds = array<i64: 16, 128>}, {transform_indices = @transform_2, window_bounds = array<i64: 16, 1>}]} {
    %c0_i32 = arith.constant 0 : i32
    %0 = arith.cmpi eq, %arg1, %c0_i32 : i32
    %1 = arith.extui %0 : i1 to i32
    %c0_i32_0 = arith.constant 0 : i32
    %2 = arith.cmpi ne, %1, %c0_i32_0 : i32
    scf.if %2 {
      %cst_11 = arith.constant 0.000000e+00 : f32
      %15 = vector.broadcast %cst_11 : f32 to vector<16x1xf32>
      %c0_12 = arith.constant 0 : index
      %c0_13 = arith.constant 0 : index
      %16 = vector.load %arg5[%c0_12, %c0_13] : memref<16x1xf32, #tpu.memory_space<vmem>>, vector<16x1xf32>
      tpu.vector_store %arg5[%c0_12, %c0_13], %15 {strides = array<i32>} : memref<16x1xf32, #tpu.memory_space<vmem>>, vector<16x1xf32>,
    } else {
    }
    %c0 = arith.constant 0 : index
    %c0_1 = arith.constant 0 : index
    %3 = vector.load %arg2[%c0, %c0_1] : memref<16x128xbf16, #tpu.memory_space<vmem>>, vector<16x128xbf16>
    %c0_2 = arith.constant 0 : index
    %c0_3 = arith.constant 0 : index
    %4 = vector.load %arg3[%c0_2, %c0_3] : memref<16x128xbf16, #tpu.memory_space<vmem>>, vector<16x128xbf16>
    %cst = arith.constant dense<0.000000e+00> : vector<16x16xf32>
    %5 = tpu.matmul %3, %4, %cst {dimension_numbers = #tpu.dot_dimension_numbers<[1], [1], [0], [0], [0, 0, 1, 0], [], []>} : vector<16x128xbf16>, vector<16x128xbf16>, vector<16x16xf32> -> vector<16x16xf32>
    %c0_4 = arith.constant 0 : index
    %c0_5 = arith.constant 0 : index
    %6 = vector.load %arg5[%c0_4, %c0_5] : memref<16x1xf32, #tpu.memory_space<vmem>>, vector<16x1xf32>
    %7 = math.exp %5 : vector<16x16xf32>
    %cst_6 = arith.constant dense<0.000000e+00> : vector<16xf32>
    %8 = vector.multi_reduction <add>, %7, %cst_6 [1] : vector<16x16xf32> to vector<16xf32>
    %9 = vector.shape_cast %8 : vector<16xf32> to vector<16x1xf32>
    %10 = arith.addf %6, %9 : vector<16x1xf32>
    %c0_7 = arith.constant 0 : index
    %c0_8 = arith.constant 0 : index
    %11 = vector.load %arg5[%c0_7, %c0_8] : memref<16x1xf32, #tpu.memory_space<vmem>>, vector<16x1xf32>
    tpu.vector_store %arg5[%c0_7, %c0_8], %10 {strides = array<i32>} : memref<16x1xf32, #tpu.memory_space<vmem>>, vector<16x1xf32>,
    %c0_i32_9 = arith.constant 0 : i32
    %12 = arith.cmpi eq, %arg1, %c0_i32_9 : i32
    %13 = arith.extui %12 : i1 to i32
    %c0_i32_10 = arith.constant 0 : i32
    %14 = arith.cmpi ne, %13, %c0_i32_10 : i32
    scf.if %14 {
      %c0_11 = arith.constant 0 : index
      %c0_12 = arith.constant 0 : index
      %15 = vector.load %arg2[%c0_11, %c0_12] : memref<16x128xbf16, #tpu.memory_space<vmem>>, vector<16x128xbf16>
      %16 = arith.extf %15 : vector<16x128xbf16> to vector<16x128xf32>
      %c0_13 = arith.constant 0 : index
      %c0_14 = arith.constant 0 : index
      %17 = vector.load %arg5[%c0_13, %c0_14] : memref<16x1xf32, #tpu.memory_space<vmem>>, vector<16x1xf32>
      %18 = arith.mulf %16, %16 : vector<16x128xf32>
      %cst_15 = arith.constant dense<0.000000e+00> : vector<16xf32>
      %19 = vector.multi_reduction <add>, %18, %cst_15 [1] : vector<16x128xf32> to vector<16xf32>
      %20 = vector.shape_cast %19 : vector<16xf32> to vector<16x1xf32>
      %21 = math.exp %20 : vector<16x1xf32>
      %22 = arith.subf %17, %21 : vector<16x1xf32>
      %c0_16 = arith.constant 0 : index
      %c0_17 = arith.constant 0 : index
      %23 = vector.load %arg4[%c0_16, %c0_17] : memref<16x1xf32, #tpu.memory_space<vmem>>, vector<16x1xf32>
      tpu.vector_store %arg4[%c0_16, %c0_17], %22 {strides = array<i32>} : memref<16x1xf32, #tpu.memory_space<vmem>>, vector<16x1xf32>,
    } else {
    }
    return
  }
  func.func @transform_0(%arg0: i32, %arg1: i32) -> (i32, i32) {
    %c0_i32 = arith.constant 0 : i32
    %c0_i32_0 = arith.constant 0 : i32
    return %arg0, %c0_i32 : i32, i32
  }
  func.func @transform_1(%arg0: i32, %arg1: i32) -> (i32, i32) {
    %c0_i32 = arith.constant 0 : i32
    %c0_i32_0 = arith.constant 0 : i32
    return %arg1, %c0_i32 : i32, i32
  }
  func.func @transform_2(%arg0: i32, %arg1: i32) -> (i32, i32) {
    %c0_i32 = arith.constant 0 : i32
    %c0_i32_0 = arith.constant 0 : i32
    return %arg0, %c0_i32 : i32, i32
  }
}

</mosaic_0001>

<bundles_post_ra>
// kernel: tpu_custom_call.1
= control target key start
LH: loop header
LB: loop body
LE: loop exit
PB: predicated region body
PF: predicated region fallthrough
CT: control target
= control target key end

     0   :  { %7 = vsyncpa [#allocation4], 0  ;;  %s286_s0 = inlined_call_operand.hbm [shape: bf16[16,128], index: 0, kind: input, shape index: {}]   ;;  %s287_s1 = inlined_call_operand.hbm [shape: bf16[16,128], index: 1, kind: input, shape index: {}]   ;;  %s288_s2 = inlined_call_operand.vmem [shape: f32[16,1], index: 2, kind: output, shape index: {}]  }
   0x1   :  { %8 = vsyncpa [#allocation6], 0  ;;  %s229_s9 = smov [#allocation3]   ;;  %s181_s13 = scalar_lea.hbm %s286_s0, 128 }
   0x2   :  { %s14_s10 = sshll.u32 %s229_s9, 4  ;;  %p182_p0 = scmp.ne.s32.totalorder %s286_s0, %s181_s13  ;;  %s15_s10 = int_to_ptr.vmem [resolvable:$true] %s14_s10 }
   0x3   :  { %p185_p1 = scmp.lt.u32.totalorder %s181_s13, %s286_s0 }
   0x5   :  { %p187_p2 = pnand %p185_p1, %p182_p0 }
   0x7   :  { %190 = shalt.err (!%p187_p2)
}
   0x8   :  { %s191_s18 = scalar_lea.vmem %s15_s10, 128  ;;  %p196_p4 = scmp.lt.s32.totalorder %s15_s10, %s15_s10 }
   0x9   :  { %p192_p3 = scmp.ne.s32.totalorder %s15_s10, %s191_s18  ;;  %p197_p5 = scmp.lt.s32.totalorder %s191_s18, %s191_s18 }
   0xb   :  { %p198_p6 = por %p197_p5, %p196_p4 }
   0xd   :  { %p199_p7 = pnand %p198_p6, %p192_p3 }
   0xf   :  { %202 = shalt.err (!%p199_p7)
}
  0x10   :  { %s230_s19 = smov 64   ;;  %s231_s20 = smov 4  }
  0x11   :  { %20 = dma.hbm_to_vmem [thread:$0]  %s286_s0, 128, %s15_s10, [#allocation4], %s230_s19, %s230_s19, %s231_s20  }
  0x12   :  { %s232_s23 = smov [#allocation5]   ;;  %s203_s27 = scalar_lea.hbm %s287_s1, 128 }
  0x13   :  { %s26_s24 = sshll.u32 %s232_s23, 4  ;;  %p204_p8 = scmp.ne.s32.totalorder %s287_s1, %s203_s27  ;;  %s27_s24 = int_to_ptr.vmem [resolvable:$true] %s26_s24 }
  0x14   :  { %p207_p9 = scmp.lt.u32.totalorder %s203_s27, %s287_s1 }
  0x16   :  { %p209_p10 = pnand %p207_p9, %p204_p8 }
  0x18   :  { %212 = shalt.err (!%p209_p10)
}
  0x19   :  { %s213_s4 = scalar_lea.vmem %s27_s24, 128  ;;  %p218_p12 = scmp.lt.s32.totalorder %s27_s24, %s27_s24 }
  0x1a   :  { %p214_p11 = scmp.ne.s32.totalorder %s27_s24, %s213_s4  ;;  %p219_p13 = scmp.lt.s32.totalorder %s213_s4, %s213_s4 }
  0x1c   :  { %p220_p0 = por %p219_p13, %p218_p12 }
  0x1e   :  { %p221_p1 = pnand %p220_p0, %p214_p11 }
  0x20   :  { %224 = shalt.err (!%p221_p1)
}
  0x21   :  { %32 = dma.hbm_to_vmem [thread:$0]  %s287_s1, 128, %s27_s24, [#allocation6], %s230_s19, %s230_s19, %s231_s20  }
  0x22   :  { %225 = dma.done.wait [#allocation4], 128  }
  0x23   :  { %226 = vsyncadd [#allocation4], 4294967168 }
  0x24   :  { %227 = dma.done.wait [#allocation6], 128  }
  0x25   :  { %228 = vsyncadd [#allocation6], 4294967168  ;;  %vm44_vm0 = vcmask 7168   ;;  %v233_v0 = vmov 0.0   ;;  %vm234_vm1 = vmmov 0   ;;  %v171_v1 = vld [vmem:[#allocation5] sm:$0xff]  }
  0x26   :  { %45 = vst.msk [vmem:[#allocation2] sm:$0xff] %vm44_vm0, %v233_v0  ;;  %46 = vst.msk [vmem:[#allocation2 + $0x8] sm:$0xff] %vm44_vm0, %v233_v0  ;;  %159 = vmatprep.subr.bf16.mxu0 %v233_v0  ;;  %161 = vmatprep.mubr.msk.bf16.mxu0 %vm234_vm1, %v233_v0  ;;  %v172_v2 = vld [vmem:[#allocation3] sm:$0xff]   ;;  %vm110_vm2 = vcmask 130048  }
  0x27   :  { %160 = vmatpush3.bf16.xpose.msra.mxu0 %v171_v1  ;;  %v154_v3 = vld [vmem:[#allocation3] sm:$0xff]  }
  0x28   :  { %v155_v4 = vunpack.c.l.bf16 %v154_v3  ;;  %v156_v6 = vunpack.c.h.bf16 %v154_v3 }
  0x2a   :  { %v131_v5 = vmul.f32 %v155_v4, %v155_v4  ;;  %v132_v7 = vmul.f32 %v156_v6, %v156_v6 }
  0x2c   :  { %133 = vadd.xlane.f32.xlu0 %v131_v5 }
  0x2d   :  { %v104_v21 = vld [vmem:[#allocation2] sm:$0xff]  ;;  %v105_v25 = vld [vmem:[#allocation2 + $0x8] sm:$0xff] }
  0x2e   :  { %162 = vmatmul.mubr.bf16.vlgmr.msra.gmra.mrb[0].mxu0 %v172_v2 }
  0x30   :  { %135 = vadd.xlane.f32.xlu0 %v132_v7 }
  0xb9   :  { %v134_v18 = vpop.xlane.xlu0 %133 }
  0xba   :  { %v137_v19 = vmul.f32 1.442695, %v134_v18 }
  0xbd   :  { %v136_v20 = vpop.xlane.xlu0 %135 }
  0xbe   :  { %v139_v22 = vmul.f32 1.442695, %v136_v20 }
 0x101   :  { %v97_v8 = vpop.f32.mrb[0].mxu0 }
 0x102   :  { %v106_v9 = vmul.f32 1.442695, %v97_v8  ;;  %v163_v10 = vpop.f32.mrb[1].mxu0 }
 0x103   :  { %v100_v11 = vpop.f32.mrb[2].mxu0 }
 0x104   :  { %173 = vpow2.f32 %v106_v9  ;;  %v108_v12 = vmul.f32 1.442695, %v100_v11  ;;  %v164_v13 = vpop.f32.mrb[3].mxu0 }
 0x106   :  { %175 = vpow2.f32 %v108_v12 }
 0x107   :  { %177 = vpow2.f32 %v137_v19 }
 0x108   :  { %179 = vpow2.f32 %v139_v22 }
 0x10e   :  { %v174_v14 = vpop.eup %173 }
 0x10f   :  { %v111_v15 = vsel %vm110_vm2, %v174_v14, 0.0 }
 0x110   :  { %v176_v16 = vpop.eup %175  ;;  %112 = vadd.xlane.f32.xlu1 %v111_v15 }
 0x111   :  { %v114_v17 = vsel %vm110_vm2, %v176_v16, 0.0  ;;  %v178_v28 = vpop.eup %177 }
 0x112   :  { %v180_v31 = vpop.eup %179 }
 0x114   :  { %115 = vadd.xlane.f32.xlu1 %v114_v17 }
 0x19d   :  { %v113_v23 = vpop.xlane.xlu1 %112 }
 0x19e   :  { %v117_v24 = vadd.f32 %v113_v23, %v104_v21 }
 0x1a0   :  { %120 = vst.msk [vmem:[#allocation2] sm:$0xff] %vm44_vm0, %v117_v24 }
 0x1a1   :  { %v116_v26 = vpop.xlane.xlu1 %115 }
 0x1a2   :  { %v118_v27 = vadd.f32 %v116_v26, %v105_v25 }
 0x1a4   :  { %121 = vst.msk [vmem:[#allocation2 + $0x8] sm:$0xff] %vm44_vm0, %v118_v27 }
 0x1a7   :  { %v129_v29 = vld [vmem:[#allocation2] sm:$0xff] }
 0x1a8   :  { %v141_v30 = vsub.f32 %v129_v29, %v178_v28 }
 0x1aa   :  { %143 = vst.msk [vmem:[%s288_s2] sm:$0xff] %vm44_vm0, %v141_v30 }
 0x1ab   :  { %v130_v32 = vld [vmem:[#allocation2 + $0x8] sm:$0xff] }
 0x1ac   :  { %v142_v33 = vsub.f32 %v130_v32, %v180_v31 }
 0x1ae   :  { %144 = vst.msk [vmem:[%s288_s2 + $0x8] sm:$0xff] %vm44_vm0, %v142_v33 }
 0x1af   :  { %149 = vsyncpa [#allocation4], 1 }
 0x1b0   :  { %150 = vsyncpa [#allocation6], 1 }

</bundles_post_ra>
